<compile_context>
chip_gen: v7x
topology: tpu7x:2x2x1
jax: 0.10.0
libtpu: 0.0.40
codegen_flags: <defaults>
</compile_context>

<pallas_src>
import functools

import jax
import jax.numpy as jnp
from jax.experimental import pallas as pl
from jax.experimental.pallas import tpu as pltpu
from jax.scipy.linalg import block_diag


def _encoder_kernel(x_ref, w1_ref, b1_ref, w2_ref, b2_ref, w3_ref, b3_ref, out_ref):
    """Fused MLP encoder: two ReLU layers + one fused (mean||logv) head.

    Weights arrive in the compute dtype (bf16 by default); operands are cast to it
    right before each MXU push.  Accumulation, bias-add and ReLU happen in f32.
    """
    w1 = w1_ref[...]
    cdt = w1.dtype  # compute dtype chosen in prepare_params (bf16 or f32)

    x = x_ref[...].astype(cdt)
    h = jnp.dot(x, w1, preferred_element_type=jnp.float32) + b1_ref[...]
    h = jnp.maximum(h, 0.0).astype(cdt)

    hidden = jnp.dot(h, w2_ref[...], preferred_element_type=jnp.float32) + b2_ref[...]
    hidden = jnp.maximum(hidden, 0.0).astype(cdt)

    out_ref[...] = (jnp.dot(hidden, w3_ref[...], preferred_element_type=jnp.float32)
                    + b3_ref[...])


def prepare_params(params, *, pack=None, compute_dtype=jnp.bfloat16):
    """One-time weight preprocessing (call once, outside the forward hot path).

    - Fuses the mean/logv heads into a single (h2, 2*latent) weight.
    - Picks a row-packing factor so the fused output is >=128 lanes wide, and
      expands each weight to the matching block-diagonal form; biases are tiled.
    - Casts weights to `compute_dtype` (bf16 default; use float32 for exact torch
      parity).  Biases stay f32 (bias-add/ReLU run in f32 on the VPU).
    """
    w1t, b1 = params["w1t"], params["b1"]      # (in, h1), (1, h1)
    w2t, b2 = params["w2t"], params["b2"]      # (h1, h2), (1, h2)
    wmt, bm = params["wmt"], params["bm"]      # (h2, L), (1, L)
    wlt, bl = params["wlt"], params["bl"]      # (h2, L), (1, L)

    wht = jnp.concatenate([wmt, wlt], axis=1)  # (h2, 2L)  fused head
    bh = jnp.concatenate([bm, bl], axis=1)     # (1, 2L)
    out_w = wht.shape[1]

    if pack is None:
        pack = max(1, -(-128 // out_w))        # ceil(128 / out_w) -> lane-dense out

    def bdiag(w):
        return block_diag(*([w] * pack)) if pack > 1 else w

    def tile_bias(b):
        return jnp.tile(b, (1, pack)).astype(jnp.float32)

    return dict(
        pack=int(pack),
        input_size=int(w1t.shape[0]),
        latent=int(wmt.shape[1]),
        w1=bdiag(w1t).astype(compute_dtype), b1=tile_bias(b1),
        w2=bdiag(w2t).astype(compute_dtype), b2=tile_bias(b2),
        w3=bdiag(wht).astype(compute_dtype), b3=tile_bias(bh),
    )


@functools.partial(jax.jit,
                   static_argnames=("input_size", "latent", "pack", "block_b"))
def _forward(x_in, w1, b1, w2, b2, w3, b3, *, input_size, latent, pack, block_b):
    # Glue: flatten like torch's .view(-1, input_size); dtype cast happens in-kernel.
    x = jnp.reshape(x_in, (-1, input_size))
    B = x.shape[0]

    # Pack `pack` consecutive rows along lanes: (B, in) -> (B/pack, pack*in).
    # Row-major contiguous reshape -> free bitcast in HBM.
    pad = (-B) % pack
    if pad:
        x = jnp.pad(x, ((0, pad), (0, 0)))
    Bp = (B + pad) // pack
    xp = jnp.reshape(x, (Bp, pack * input_size))

    out_w = pack * 2 * latent

    # Batch tile: 1024 packed rows keeps live intermediates + double buffers at
    # ~5-6 MiB (fits v5e's 16 MiB default scoped VMEM with margin) while fully
    # amortizing per-grid-step overhead.  tb is either a multiple of 8 or the full
    # batch, so the (8,128) block constraint is always satisfied.
    tb = min(block_b, Bp)
    grid = (pl.cdiv(Bp, tb),)

    # Full-array blocks for weights/biases: constant index_map -> VMEM-resident
    # across batch tiles (Pallas skips the re-DMA when the block index is unchanged).
    def full_spec(shape):
        return pl.BlockSpec(shape, lambda i: (0, 0))

    out = pl.pallas_call(
        _encoder_kernel,
        out_shape=jax.ShapeDtypeStruct((Bp, out_w), jnp.float32),
        grid_spec=pltpu.PrefetchScalarGridSpec(
            num_scalar_prefetch=0,
            grid=grid,
            in_specs=[
                pl.BlockSpec((tb, pack * input_size), lambda i: (i, 0)),  # x tile
                full_spec(w1.shape), full_spec(b1.shape),
                full_spec(w2.shape), full_spec(b2.shape),
                full_spec(w3.shape), full_spec(b3.shape),
            ],
            out_specs=pl.BlockSpec((tb, out_w), lambda i: (i, 0)),
        ),
        compiler_params=pltpu.CompilerParams(
            dimension_semantics=("parallel",)),
    )(xp, w1, b1, w2, b2, w3, b3)

    # Unpack lanes back to rows (free contiguous reshape), drop padding, split heads.
    out = jnp.reshape(out, (B + pad, 2 * latent))[:B]
    return out[:, :latent], out[:, latent:]


def linear_encoder_forward(input_sequence, prep, *, block_b=1024):
    """Pallas forward pass. Returns (mean, logv) like the torch module."""
    return _forward(input_sequence,
                    prep["w1"], prep["b1"], prep["w2"], prep["b2"],
                    prep["w3"], prep["b3"],
                    input_size=prep["input_size"], latent=prep["latent"],
                    pack=prep["pack"], block_b=block_b)


def init_params(key, input_size, hidden_sizes, latent_size):
    """Deterministic init mimicking nn.Linear shapes; stored pre-transposed (f32)."""
    h1, h2 = hidden_sizes
    keys = jax.random.split(key, 8)

    def linear(kw, kb, fan_in, fan_out):
        bound = 1.0 / jnp.sqrt(fan_in)
        w = jax.random.uniform(kw, (fan_out, fan_in), jnp.float32, -bound, bound)
        b = jax.random.uniform(kb, (fan_out,), jnp.float32, -bound, bound)
        return w.T, b[None, :]           # (in, out) weight, (1, out) bias

    w1t, b1 = linear(keys[0], keys[1], input_size, h1)
    w2t, b2 = linear(keys[2], keys[3], h1, h2)
    wmt, bm = linear(keys[4], keys[5], h2, latent_size)
    wlt, bl = linear(keys[6], keys[7], h2, latent_size)
    return dict(w1t=w1t, b1=b1, w2t=w2t, b2=b2,
                wmt=wmt, bm=bm, wlt=wlt, bl=bl)


def reference_forward(x, params, *, input_size, compute_dtype=None):
    """Plain-JAX reference.  compute_dtype=bf16 mimics the kernel's bf16 operands."""
    xf = jnp.reshape(x, (-1, input_size)).astype(jnp.float32)

    def mm(a, w):
        if compute_dtype is not None:
            return jnp.dot(a.astype(compute_dtype), w.astype(compute_dtype),
                           preferred_element_type=jnp.float32)
        return jnp.dot(a, w, preferred_element_type=jnp.float32)

    h = jnp.maximum(mm(xf, params["w1t"]) + params["b1"], 0.0)
    hd = jnp.maximum(mm(h, params["w2t"]) + params["b2"], 0.0)
    mean = mm(hd, params["wmt"]) + params["bm"]
    logv = mm(hd, params["wlt"]) + params["bl"]
    return mean, logv


if __name__ == "__main__":
    # argdict equivalent: input_size=32, hidden_size_encoder=[64, 48], latent_size=16
    input_size = 32
    hidden_sizes = (64, 48)
    latent_size = 16

    key = jax.random.PRNGKey(0)
    k_params, k_x = jax.random.split(key)
    params = init_params(k_params, input_size, hidden_sizes, latent_size)

    # input_sequence shape (2, 4, 32) -> view(-1, 32) gives a batch of 8 rows
    x = jax.random.normal(k_x, (2, 4, input_size), dtype=jnp.float32)

    # --- default perf mode: bf16 matmul operands, f32 accumulation/bias/ReLU ------
    prep_bf16 = prepare_params(params, compute_dtype=jnp.bfloat16)
    mean, logv = linear_encoder_forward(x, prep_bf16)
    jax.block_until_ready((mean, logv))
    assert mean.shape == (8, latent_size) and logv.shape == (8, latent_size)

    m_bf, l_bf = reference_forward(x, params, input_size=input_size,
                                   compute_dtype=jnp.bfloat16)
    assert jnp.allclose(mean, m_bf, atol=2e-3, rtol=2e-3)
    assert jnp.allclose(logv, l_bf, atol=2e-3, rtol=2e-3)

    m_f32, l_f32 = reference_forward(x, params, input_size=input_size)
    assert jnp.allclose(mean, m_f32, atol=5e-2, rtol=5e-2)   # bf16 vs torch-f32 ref
    assert jnp.allclose(logv, l_f32, atol=5e-2, rtol=5e-2)

    # --- exact-precision mode (matches the torch .float() path bit-for-bit-ish) ---
    prep_f32 = prepare_params(params, compute_dtype=jnp.float32)
    mean32, logv32 = linear_encoder_forward(x, prep_f32)
    jax.block_until_ready((mean32, logv32))
    assert jnp.allclose(mean32, m_f32, atol=1e-5, rtol=1e-5)
    assert jnp.allclose(logv32, l_f32, atol=1e-5, rtol=1e-5)

    # --- larger batch: multi-tile grid, row-pack padding and a partial last tile ---
    xb = jax.random.normal(jax.random.PRNGKey(1), (4099, input_size), jnp.float32)
    mb, lb = linear_encoder_forward(xb, prep_bf16)
    jax.block_until_ready((mb, lb))
    mb_ref, lb_ref = reference_forward(xb, params, input_size=input_size,
                                       compute_dtype=jnp.bfloat16)
    assert mb.shape == (4099, latent_size) and lb.shape == (4099, latent_size)
    assert jnp.allclose(mb, mb_ref, atol=2e-3, rtol=2e-3)
    assert jnp.allclose(lb, lb_ref, atol=2e-3, rtol=2e-3)

    print("KERNEL_OK")
</pallas_src>

<mosaic_0001>
module attributes {stable_mosaic.version = 11 : i64} {
  func.func @_encoder_kernel(%arg0: i32, %arg1: memref<2x128xf32, #tpu.memory_space<vmem>>, %arg2: memref<128x256xbf16, #tpu.memory_space<vmem>>, %arg3: memref<1x256xf32, #tpu.memory_space<vmem>>, %arg4: memref<256x192xbf16, #tpu.memory_space<vmem>>, %arg5: memref<1x192xf32, #tpu.memory_space<vmem>>, %arg6: memref<192x128xbf16, #tpu.memory_space<vmem>>, %arg7: memref<1x128xf32, #tpu.memory_space<vmem>>, %arg8: memref<2x128xf32, #tpu.memory_space<vmem>>) attributes {dimension_semantics = [#tpu.dimension_semantics<parallel>], iteration_bounds = array<i64: 1>, scalar_prefetch = 0 : i64, scratch_operands = 0 : i64, tpu.core_type = #tpu.core_type<tc>, window_params = [{transform_indices = @transform_0, window_bounds = array<i64: 2, 128>}, {pipeline_mode = #tpu.pipeline_mode<synchronous>, transform_indices = @transform_1, window_bounds = array<i64: 128, 256>}, {pipeline_mode = #tpu.pipeline_mode<synchronous>, transform_indices = @transform_2, window_bounds = array<i64: 1, 256>}, {pipeline_mode = #tpu.pipeline_mode<synchronous>, transform_indices = @transform_3, window_bounds = array<i64: 256, 192>}, {pipeline_mode = #tpu.pipeline_mode<synchronous>, transform_indices = @transform_4, window_bounds = array<i64: 1, 192>}, {pipeline_mode = #tpu.pipeline_mode<synchronous>, transform_indices = @transform_5, window_bounds = array<i64: 192, 128>}, {pipeline_mode = #tpu.pipeline_mode<synchronous>, transform_indices = @transform_6, window_bounds = array<i64: 1, 128>}, {transform_indices = @transform_7, window_bounds = array<i64: 2, 128>}]} {
    %c0 = arith.constant 0 : index
    %c0_0 = arith.constant 0 : index
    %0 = vector.load %arg2[%c0, %c0_0] : memref<128x256xbf16, #tpu.memory_space<vmem>>, vector<128x256xbf16>
    %c0_1 = arith.constant 0 : index
    %c0_2 = arith.constant 0 : index
    %1 = vector.load %arg1[%c0_1, %c0_2] : memref<2x128xf32, #tpu.memory_space<vmem>>, vector<2x128xf32>
    %2 = arith.truncf %1 : vector<2x128xf32> to vector<2x128xbf16>
    %cst = arith.constant dense<0.000000e+00> : vector<2x256xf32>
    %3 = tpu.matmul %2, %0, %cst {dimension_numbers = #tpu.dot_dimension_numbers<[1], [0], [0], [1], [0, 0, 1, 1], [], []>} : vector<2x128xbf16>, vector<128x256xbf16>, vector<2x256xf32> -> vector<2x256xf32>
    %c0_3 = arith.constant 0 : index
    %c0_4 = arith.constant 0 : index
    %4 = vector.load %arg3[%c0_3, %c0_4] : memref<1x256xf32, #tpu.memory_space<vmem>>, vector<1x256xf32>
    %5 = vector.broadcast %4 : vector<1x256xf32> to vector<2x256xf32>
    %6 = arith.addf %3, %5 : vector<2x256xf32>
    %cst_5 = arith.constant 0.000000e+00 : f32
    %7 = vector.broadcast %cst_5 : f32 to vector<2x256xf32>
    %8 = arith.maximumf %6, %7 : vector<2x256xf32>
    %9 = arith.truncf %8 : vector<2x256xf32> to vector<2x256xbf16>
    %c0_6 = arith.constant 0 : index
    %c0_7 = arith.constant 0 : index
    %10 = vector.load %arg4[%c0_6, %c0_7] : memref<256x192xbf16, #tpu.memory_space<vmem>>, vector<256x192xbf16>
    %cst_8 = arith.constant dense<0.000000e+00> : vector<2x192xf32>
    %11 = tpu.matmul %9, %10, %cst_8 {dimension_numbers = #tpu.dot_dimension_numbers<[1], [0], [0], [1], [0, 0, 1, 1], [], []>} : vector<2x256xbf16>, vector<256x192xbf16>, vector<2x192xf32> -> vector<2x192xf32>
    %c0_9 = arith.constant 0 : index
    %c0_10 = arith.constant 0 : index
    %12 = vector.load %arg5[%c0_9, %c0_10] : memref<1x192xf32, #tpu.memory_space<vmem>>, vector<1x192xf32>
    %13 = vector.broadcast %12 : vector<1x192xf32> to vector<2x192xf32>
    %14 = arith.addf %11, %13 : vector<2x192xf32>
    %cst_11 = arith.constant 0.000000e+00 : f32
    %15 = vector.broadcast %cst_11 : f32 to vector<2x192xf32>
    %16 = arith.maximumf %14, %15 : vector<2x192xf32>
    %17 = arith.truncf %16 : vector<2x192xf32> to vector<2x192xbf16>
    %c0_12 = arith.constant 0 : index
    %c0_13 = arith.constant 0 : index
    %18 = vector.load %arg6[%c0_12, %c0_13] : memref<192x128xbf16, #tpu.memory_space<vmem>>, vector<192x128xbf16>
    %cst_14 = arith.constant dense<0.000000e+00> : vector<2x128xf32>
    %19 = tpu.matmul %17, %18, %cst_14 {dimension_numbers = #tpu.dot_dimension_numbers<[1], [0], [0], [1], [0, 0, 1, 1], [], []>} : vector<2x192xbf16>, vector<192x128xbf16>, vector<2x128xf32> -> vector<2x128xf32>
    %c0_15 = arith.constant 0 : index
    %c0_16 = arith.constant 0 : index
    %20 = vector.load %arg7[%c0_15, %c0_16] : memref<1x128xf32, #tpu.memory_space<vmem>>, vector<1x128xf32>
    %21 = vector.broadcast %20 : vector<1x128xf32> to vector<2x128xf32>
    %22 = arith.addf %19, %21 : vector<2x128xf32>
    %c0_17 = arith.constant 0 : index
    %c0_18 = arith.constant 0 : index
    %23 = vector.load %arg8[%c0_17, %c0_18] : memref<2x128xf32, #tpu.memory_space<vmem>>, vector<2x128xf32>
    tpu.vector_store %arg8[%c0_17, %c0_18], %22 {strides = array<i32>} : memref<2x128xf32, #tpu.memory_space<vmem>>, vector<2x128xf32>,
    return
  }
  func.func @transform_0(%arg0: i32) -> (i32, i32) {
    %c0_i32 = arith.constant 0 : i32
    %c0_i32_0 = arith.constant 0 : i32
    return %arg0, %c0_i32 : i32, i32
  }
  func.func @transform_1(%arg0: i32) -> (i32, i32) {
    %c0_i32 = arith.constant 0 : i32
    %c0_i32_0 = arith.constant 0 : i32
    %c0_i32_1 = arith.constant 0 : i32
    return %c0_i32, %c0_i32_0 : i32, i32
  }
  func.func @transform_2(%arg0: i32) -> (i32, i32) {
    %c0_i32 = arith.constant 0 : i32
    %c0_i32_0 = arith.constant 0 : i32
    %c0_i32_1 = arith.constant 0 : i32
    return %c0_i32, %c0_i32_0 : i32, i32
  }
  func.func @transform_3(%arg0: i32) -> (i32, i32) {
    %c0_i32 = arith.constant 0 : i32
    %c0_i32_0 = arith.constant 0 : i32
    %c0_i32_1 = arith.constant 0 : i32
    return %c0_i32, %c0_i32_0 : i32, i32
  }
  func.func @transform_4(%arg0: i32) -> (i32, i32) {
    %c0_i32 = arith.constant 0 : i32
    %c0_i32_0 = arith.constant 0 : i32
    %c0_i32_1 = arith.constant 0 : i32
    return %c0_i32, %c0_i32_0 : i32, i32
  }
  func.func @transform_5(%arg0: i32) -> (i32, i32) {
    %c0_i32 = arith.constant 0 : i32
    %c0_i32_0 = arith.constant 0 : i32
    %c0_i32_1 = arith.constant 0 : i32
    return %c0_i32, %c0_i32_0 : i32, i32
  }
  func.func @transform_6(%arg0: i32) -> (i32, i32) {
    %c0_i32 = arith.constant 0 : i32
    %c0_i32_0 = arith.constant 0 : i32
    %c0_i32_1 = arith.constant 0 : i32
    return %c0_i32, %c0_i32_0 : i32, i32
  }
  func.func @transform_7(%arg0: i32) -> (i32, i32) {
    %c0_i32 = arith.constant 0 : i32
    %c0_i32_0 = arith.constant 0 : i32
    return %arg0, %c0_i32 : i32, i32
  }
}

</mosaic_0001>

<bundles_post_ra>
// kernel: _forward.1
= control target key start
LH: loop header
LB: loop body
LE: loop exit
PB: predicated region body
PF: predicated region fallthrough
CT: control target
= control target key end

     0   :  { %v730_v1 = vmov 0   ;;  %v47_v61 = vlaneseq  ;;  %vm534_vm0 = vcmask 523264   ;;  %s979_s1 = inlined_call_operand.vmem [shape: bf16[128,256], index: 1, kind: input, shape index: {}]   ;;  %s980_s3 = inlined_call_operand.vmem [shape: bf16[256,192], index: 3, kind: input, shape index: {}]   ;;  %s981_s0 = inlined_call_operand.vmem [shape: f32[2,128], index: 0, kind: input, shape index: {}]   ;;  %s982_s5 = inlined_call_operand.vmem [shape: bf16[192,128], index: 5, kind: input, shape index: {}]   ;;  %s983_s2 = inlined_call_operand.vmem [shape: f32[1,256], index: 2, kind: input, shape index: {}]   ;;  %s984_s4 = inlined_call_operand.vmem [shape: f32[1,192], index: 4, kind: input, shape index: {}]   ;;  %s985_s6 = inlined_call_operand.vmem [shape: f32[1,128], index: 6, kind: input, shape index: {}]   ;;  %s986_s7 = inlined_call_operand.vmem [shape: f32[2,128], index: 7, kind: output, shape index: {}]  }
   0x1   :  { %v646_v0 = vld [vmem:[%s979_s1 + $0x4] ss:$8 sps:$4 sm:$0xff]   ;;  %169 = vmatprep.mubr.bf16.mxu0 %v730_v1  ;;  %v648_v2 = vld [vmem:[%s979_s1] ss:$8 sps:$4 sm:$0xff]   ;;  %v649_v3 = vld [vmem:[%s979_s1 + $0x14] ss:$8 sps:$4 sm:$0xff]  }
   0x2   :  { %137 = vmatprep.subr.bf16.mxu0 %v646_v0  ;;  %v651_v4 = vld [vmem:[%s979_s1 + $0x10] ss:$8 sps:$4 sm:$0xff]   ;;  %v652_v5 = vld [vmem:[%s979_s1 + $0x24] ss:$8 sps:$4 sm:$0xff]   ;;  %v654_v6 = vld [vmem:[%s979_s1 + $0x20] ss:$8 sps:$4 sm:$0xff]  }
   0x3   :  { %138 = vmatpush1.bf16.msra.mxu0 %v648_v2  ;;  %v655_v7 = vld [vmem:[%s979_s1 + $0x34] ss:$8 sps:$4 sm:$0xff]   ;;  %v657_v8 = vld [vmem:[%s979_s1 + $0x30] ss:$8 sps:$4 sm:$0xff]   ;;  %v658_v9 = vld [vmem:[%s979_s1 + $0x44] ss:$8 sps:$4 sm:$0xff]  }
   0x4   :  { %139 = vmatprep.subr.bf16.mxu0 %v649_v3  ;;  %v670_v10 = vld [vmem:[%s980_s3 + $0x4] ss:$8 sps:$4 sm:$0xff]   ;;  %v672_v11 = vld [vmem:[%s980_s3] ss:$8 sps:$4 sm:$0xff]   ;;  %v673_v12 = vld [vmem:[%s980_s3 + $0x14] ss:$8 sps:$4 sm:$0xff]  }
   0x5   :  { %386 = vmatprep.subr.bf16.mxu1 %v670_v10  ;;  %v660_v13 = vld [vmem:[%s979_s1 + $0x40] ss:$8 sps:$4 sm:$0xff]   ;;  %v675_v14 = vld [vmem:[%s980_s3 + $0x10] ss:$8 sps:$4 sm:$0xff]   ;;  %v676_v15 = vld [vmem:[%s980_s3 + $0x24] ss:$8 sps:$4 sm:$0xff]  }
   0x6   :  { %387 = vmatpush1.bf16.msra.mxu1 %v672_v11  ;;  %v661_v16 = vld [vmem:[%s979_s1 + $0x54] ss:$8 sps:$4 sm:$0xff]   ;;  %v663_v17 = vld [vmem:[%s979_s1 + $0x50] ss:$8 sps:$4 sm:$0xff]   ;;  %v678_v18 = vld [vmem:[%s980_s3 + $0x20] ss:$8 sps:$4 sm:$0xff]  }
   0x7   :  { %140 = vmatpush1.bf16.msra.mxu0 %v651_v4  ;;  %388 = vmatprep.subr.bf16.mxu1 %v673_v12  ;;  %v679_v19 = vld [vmem:[%s980_s3 + $0x34] ss:$8 sps:$4 sm:$0xff]   ;;  %v664_v20 = vld [vmem:[%s979_s1 + $0x64] ss:$8 sps:$4 sm:$0xff]   ;;  %v666_v21 = vld [vmem:[%s979_s1 + $0x60] ss:$8 sps:$4 sm:$0xff]  }
   0x8   :  { %141 = vmatprep.subr.bf16.mxu0 %v652_v5  ;;  %v681_v22 = vld [vmem:[%s980_s3 + $0x30] ss:$8 sps:$4 sm:$0xff]   ;;  %v682_v23 = vld [vmem:[%s980_s3 + $0x44] ss:$8 sps:$4 sm:$0xff]   ;;  %v667_v24 = vld [vmem:[%s979_s1 + $0x74] ss:$8 sps:$4 sm:$0xff]  }
   0x9   :  { %v669_v25 = vld [vmem:[%s979_s1 + $0x70] ss:$8 sps:$4 sm:$0xff]   ;;  %v43_v26 = vld [vmem:[%s981_s0] sm:$0x3]  ;;  %v685_v28 = vld [vmem:[%s980_s3 + $0x54] ss:$8 sps:$4 sm:$0xff]  }
   0xa   :  { %389 = vmatpush1.bf16.msra.mxu1 %v675_v14  ;;  %v684_v27 = vld [vmem:[%s980_s3 + $0x40] ss:$8 sps:$4 sm:$0xff]   ;;  %v687_v29 = vld [vmem:[%s980_s3 + $0x50] ss:$8 sps:$4 sm:$0xff]   ;;  %v44_v30 = vpack.c.bf16 %v43_v26, %v43_v26  ;;  %v688_v31 = vld [vmem:[%s980_s3 + $0x64] ss:$8 sps:$4 sm:$0xff]  }
   0xb   :  { %142 = vmatpush1.bf16.msra.mxu0 %v654_v6  ;;  %390 = vmatprep.subr.bf16.mxu1 %v676_v15  ;;  %v690_v32 = vld [vmem:[%s980_s3 + $0x60] ss:$8 sps:$4 sm:$0xff]   ;;  %v691_v33 = vld [vmem:[%s980_s3 + $0x74] ss:$8 sps:$4 sm:$0xff]   ;;  %v693_v34 = vld [vmem:[%s980_s3 + $0x70] ss:$8 sps:$4 sm:$0xff]  }
   0xc   :  { %143 = vmatprep.subr.bf16.mxu0 %v655_v7  ;;  %v694_v35 = vld [vmem:[%s980_s3 + $0x84] ss:$8 sps:$4 sm:$0xff]   ;;  %v696_v36 = vld [vmem:[%s980_s3 + $0x80] ss:$8 sps:$4 sm:$0xff]   ;;  %v697_v37 = vld [vmem:[%s980_s3 + $0x94] ss:$8 sps:$4 sm:$0xff]  }
   0xd   :  { %v699_v38 = vld [vmem:[%s980_s3 + $0x90] ss:$8 sps:$4 sm:$0xff]   ;;  %v700_v39 = vld [vmem:[%s980_s3 + $0xa4] ss:$8 sps:$4 sm:$0xff]   ;;  %v702_v40 = vld [vmem:[%s980_s3 + $0xa0] ss:$8 sps:$4 sm:$0xff]  }
   0xe   :  { %391 = vmatpush1.bf16.msra.mxu1 %v678_v18  ;;  %v703_v41 = vld [vmem:[%s980_s3 + $0xb4] ss:$8 sps:$4 sm:$0xff]   ;;  %v705_v42 = vld [vmem:[%s980_s3 + $0xb0] ss:$8 sps:$4 sm:$0xff]   ;;  %v706_v43 = vld [vmem:[%s980_s3 + $0xc4] ss:$8 sps:$4 sm:$0xff]  }
   0xf   :  { %144 = vmatpush1.bf16.msra.mxu0 %v657_v8  ;;  %392 = vmatprep.subr.bf16.mxu1 %v679_v19  ;;  %v708_v44 = vld [vmem:[%s980_s3 + $0xc0] ss:$8 sps:$4 sm:$0xff]   ;;  %v709_v45 = vld [vmem:[%s980_s3 + $0xd4] ss:$8 sps:$4 sm:$0xff]   ;;  %v711_v46 = vld [vmem:[%s980_s3 + $0xd0] ss:$8 sps:$4 sm:$0xff]  }
  0x10   :  { %145 = vmatprep.subr.bf16.mxu0 %v658_v9  ;;  %v712_v47 = vld [vmem:[%s980_s3 + $0xe4] ss:$8 sps:$4 sm:$0xff]   ;;  %v714_v48 = vld [vmem:[%s980_s3 + $0xe0] ss:$8 sps:$4 sm:$0xff]   ;;  %v715_v49 = vld [vmem:[%s980_s3 + $0xf4] ss:$8 sps:$4 sm:$0xff]  }
  0x11   :  { %v717_v50 = vld [vmem:[%s980_s3 + $0xf0] ss:$8 sps:$4 sm:$0xff]   ;;  %v718_v51 = vld [vmem:[%s982_s5] sm:$0xff]   ;;  %v719_v52 = vld [vmem:[%s982_s5 + $0x8] sm:$0xff]   ;;  %v48_v62 = vshrl.u32 %v47_v61, 7 }
  0x12   :  { %393 = vmatpush1.bf16.msra.mxu1 %v681_v22  ;;  %v720_v53 = vld [vmem:[%s982_s5 + $0x10] sm:$0xff]   ;;  %v721_v54 = vld [vmem:[%s982_s5 + $0x18] sm:$0xff]   ;;  %v722_v55 = vld [vmem:[%s982_s5 + $0x20] sm:$0xff]  }
  0x13   :  { %146 = vmatpush1.bf16.msra.mxu0 %v660_v13  ;;  %394 = vmatprep.subr.bf16.mxu1 %v682_v23  ;;  %v723_v56 = vld [vmem:[%s982_s5 + $0x28] sm:$0xff]   ;;  %v724_v57 = vld [vmem:[%s982_s5 + $0x30] sm:$0xff]   ;;  %v725_v58 = vld [vmem:[%s982_s5 + $0x38] sm:$0xff]   ;;  %v49_v63 = vsub.s32 0, %v48_v62  ;;  %v53_v2 = vsub.s32 1, %v48_v62 }
  0x14   :  { %147 = vmatprep.subr.bf16.mxu0 %v661_v16  ;;  %v726_v59 = vld [vmem:[%s982_s5 + $0x40] sm:$0xff]   ;;  %v727_v60 = vld [vmem:[%s982_s5 + $0x48] sm:$0xff]   ;;  %v728_v15 = vld [vmem:[%s982_s5 + $0x50] sm:$0xff]  }
  0x15   :  { %v45_v0 = vld [vmem:[%s983_s2] sm:$0x3]  ;;  %v729_v16 = vld [vmem:[%s982_s5 + $0x58] sm:$0xff]  }
  0x16   :  { %395 = vmatpush1.bf16.msra.mxu1 %v684_v27  ;;  %v50_v3 = vrot.slane %v45_v0, %v49_v63  ;;  %v54_v4 = vrot.slane %v45_v0, %v53_v2 }
  0x17   :  { %148 = vmatpush1.bf16.msra.mxu0 %v663_v17  ;;  %396 = vmatprep.subr.bf16.mxu1 %v685_v28  ;;  %v214_v17 = vld [vmem:[%s984_s4] sm:$0x3] }
  0x18   :  { %149 = vmatprep.subr.bf16.mxu0 %v664_v20  ;;  %v219_v18 = vrot.slane %v214_v17, %v49_v63  ;;  %v223_v19 = vrot.slane %v214_v17, %v53_v2 }
  0x1a   :  { %397 = vmatpush1.bf16.msra.mxu1 %v687_v29  ;;  %v631_v29 = vld [vmem:[%s985_s6] ss:$0 sm:$0xff] }
  0x1b   :  { %150 = vmatpush1.bf16.msra.mxu0 %v666_v21  ;;  %398 = vmatprep.subr.bf16.mxu1 %v688_v31 }
  0x1c   :  { %151 = vmatprep.subr.bf16.mxu0 %v667_v24 }
  0x1e   :  { %399 = vmatpush1.bf16.msra.mxu1 %v690_v32 }
  0x1f   :  { %152 = vmatpush1.bf16.msra.mxu0 %v669_v25  ;;  %400 = vmatprep.subr.bf16.mxu1 %v691_v33 }
  0x20   :  { %538 = vmatprep.subr.bf16.mxu0 %v730_v1 }
  0x22   :  { %170 = vmatmul.mubr.bf16.vlgmr.msra.gmra.mrb[0].mxu0 %v44_v30  ;;  %401 = vmatpush1.bf16.msra.mxu1 %v693_v34 }
  0x23   :  { %402 = vmatprep.subr.bf16.mxu1 %v694_v35  ;;  %539 = vmatpush1.bf16.msra.mxu0 %v718_v51 }
  0x24   :  { %540 = vmatprep.subr.bf16.mxu0 %v730_v1 }
  0x26   :  { %403 = vmatpush1.bf16.msra.mxu1 %v696_v36 }
  0x27   :  { %404 = vmatprep.subr.bf16.mxu1 %v697_v37  ;;  %541 = vmatpush1.bf16.msra.mxu0 %v719_v52 }
  0x28   :  { %542 = vmatprep.subr.bf16.mxu0 %v730_v1 }
  0x2a   :  { %405 = vmatpush1.bf16.msra.mxu1 %v699_v38 }
  0x2b   :  { %406 = vmatprep.subr.bf16.mxu1 %v700_v39  ;;  %543 = vmatpush1.bf16.msra.mxu0 %v720_v53 }
  0x2c   :  { %544 = vmatprep.subr.bf16.mxu0 %v730_v1 }
  0x2e   :  { %407 = vmatpush1.bf16.msra.mxu1 %v702_v40 }
  0x2f   :  { %408 = vmatprep.subr.bf16.mxu1 %v703_v41  ;;  %545 = vmatpush1.bf16.msra.mxu0 %v721_v54 }
  0x30   :  { %546 = vmatprep.subr.bf16.mxu0 %v730_v1 }
  0x32   :  { %409 = vmatpush1.bf16.msra.mxu1 %v705_v42 }
  0x33   :  { %410 = vmatprep.subr.bf16.mxu1 %v706_v43  ;;  %547 = vmatpush1.bf16.msra.mxu0 %v722_v55 }
  0x34   :  { %548 = vmatprep.subr.bf16.mxu0 %v730_v1 }
  0x36   :  { %411 = vmatpush1.bf16.msra.mxu1 %v708_v44 }
  0x37   :  { %412 = vmatprep.subr.bf16.mxu1 %v709_v45  ;;  %549 = vmatpush1.bf16.msra.mxu0 %v723_v56 }
  0x38   :  { %550 = vmatprep.subr.bf16.mxu0 %v730_v1 }
  0x3a   :  { %413 = vmatpush1.bf16.msra.mxu1 %v711_v46 }
  0x3b   :  { %414 = vmatprep.subr.bf16.mxu1 %v712_v47  ;;  %551 = vmatpush1.bf16.msra.mxu0 %v724_v57 }
  0x3c   :  { %552 = vmatprep.subr.bf16.mxu0 %v730_v1 }
  0x3e   :  { %415 = vmatpush1.bf16.msra.mxu1 %v714_v48 }
  0x3f   :  { %416 = vmatprep.subr.bf16.mxu1 %v715_v49  ;;  %553 = vmatpush1.bf16.msra.mxu0 %v725_v58 }
  0x40   :  { %554 = vmatprep.subr.bf16.mxu0 %v730_v1 }
  0x42   :  { %417 = vmatpush1.bf16.msra.mxu1 %v717_v50 }
  0x43   :  { %555 = vmatpush1.bf16.msra.mxu0 %v726_v59 }
  0x44   :  { %556 = vmatprep.subr.bf16.mxu0 %v730_v1 }
  0x47   :  { %557 = vmatpush1.bf16.msra.mxu0 %v727_v60 }
  0x48   :  { %558 = vmatprep.subr.bf16.mxu0 %v730_v1 }
  0x4b   :  { %559 = vmatpush1.bf16.msra.mxu0 %v728_v15 }
  0x4c   :  { %560 = vmatprep.subr.bf16.mxu0 %v730_v1 }
  0x4f   :  { %561 = vmatpush1.bf16.msra.mxu0 %v729_v16 }
  0xf5   :  { %v171_v5 = vpop.f32.mrb[0].mxu0 }
  0xf6   :  { %v172_v6 = vadd.f32 %v171_v5, %v50_v3  ;;  %v173_v7 = vpop.f32.mrb[1].mxu0 }
  0xf7   :  { %v174_v8 = vadd.f32 %v173_v7, %v54_v4  ;;  %v175_v9 = vpop.f32.mrb[2].mxu0 }
  0xf8   :  { %v178_v10 = vmax.f32 %v172_v6, 0.0  ;;  %v176_v11 = vpop.f32.mrb[3].mxu0 }
  0xf9   :  { %v179_v12 = vmax.f32 %v174_v8, 0.0 }
  0xfa   :  { %v180_v14 = vpack.c.bf16 %v178_v10, %v178_v10 }
  0xfb   :  { %v181_v13 = vpack.c.bf16 %v179_v12, %v179_v12 }
  0xfd   :  { %418 = vmatprep.mubr.bf16.mxu1 %v181_v13 }
  0xfe   :  { %419 = vmatmul.mubr.bf16.vlgmr.msra.gmra.mrb[0].mxu1 %v180_v14 }
 0x1d1   :  { %v420_v20 = vpop.f32.mrb[0].mxu1 }
 0x1d2   :  { %v421_v21 = vadd.f32 %v420_v20, %v219_v18  ;;  %v422_v22 = vpop.f32.mrb[1].mxu1 }
 0x1d3   :  { %v423_v23 = vadd.f32 %v422_v22, %v223_v19  ;;  %v424_v24 = vpop.f32.mrb[2].mxu1 }
 0x1d4   :  { %v427_v25 = vmax.f32 %v421_v21, 0.0  ;;  %v425_v26 = vpop.f32.mrb[3].mxu1 }
 0x1d5   :  { %v428_v27 = vmax.f32 %v423_v23, 0.0 }
 0x1d6   :  { %v429_v28 = vpack.c.bf16 %v427_v25, %v427_v25 }
 0x1d7   :  { %v430_v1 = vpack.c.bf16 %v428_v27, %v428_v27 }
 0x1d9   :  { %644 = vmatprep.mubr.msk.bf16.mxu0 %vm534_vm0, %v430_v1 }
 0x1da   :  { %571 = vmatmul.mubr.bf16.vlgmr.msra.gmra.mrb[4].mxu0 %v429_v28 }
 0x2ad   :  { %v572_v30 = vpop.f32.mrb[4].mxu0 }
 0x2ae   :  { %v573_v31 = vadd.f32 %v631_v29, %v572_v30  ;;  %v574_v32 = vpop.f32.mrb[5].mxu0 }
 0x2af   :  { %v575_v33 = vpop.f32.mrb[6].mxu0 }
 0x2b0   :  { %578 = vst [vmem:[%s986_s7] sm:$0x3] %v573_v31  ;;  %v576_v34 = vpop.f32.mrb[7].mxu0 }

</bundles_post_ra>
